<compile_context>
chip_gen: v5e
topology: v5e:2x2
jax: 0.10.0
libtpu: 0.0.40
codegen_flags: <defaults>
</compile_context>

<pallas_src>
import functools

import numpy as np
import jax
import jax.numpy as jnp
from jax.experimental import pallas as pl
from jax.experimental.pallas import tpu as pltpu

_LANES = 128        # vreg lane width; last dim of the working layout
_TILE_ROWS = 2048   # rows per block -> 2048*128*4 B = 1 MiB f32 per block


# ----------------------------------------------------------------------------
# Kernel: elementwise pseudo-Huber on a (TILE_ROWS, 128) lane-dense block
# ----------------------------------------------------------------------------
def _pseudo_huber_kernel(x_ref, o_ref, *, delta):
    d = float(delta)
    x = x_ref[...].astype(jnp.float32)
    r = jnp.sqrt(x * x + jnp.float32(d * d))          # EUP sqrt, VPU mul/add
    out = (r - jnp.float32(d)) if d >= 0.0 else (-r - jnp.float32(d))
    o_ref[...] = out.astype(o_ref.dtype)


# ----------------------------------------------------------------------------
# Wrapper: lane-dense (rows, 128) view -> tiled, pipelined pallas_call
# ----------------------------------------------------------------------------
def pseudo_huber(x, delta=1.0):
    orig_shape = x.shape
    # torch promotes integer inputs to float; keep floating dtypes as-is so the
    # kernel writes the narrow dtype directly (no extra HBM pass for a cast).
    out_dtype = x.dtype if jnp.issubdtype(x.dtype, jnp.floating) else jnp.float32

    flat = x.reshape(-1)
    n = flat.shape[0]
    rem = n % _LANES
    if rem:
        # Fallback for ragged sizes only; common case (n % 128 == 0) copies nothing.
        flat = jnp.pad(flat, (0, _LANES - rem))
    rows = flat.shape[0] // _LANES
    x2 = flat.reshape(rows, _LANES)

    block_rows = min(_TILE_ROWS, rows)                # full-dim block if small
    grid = (pl.cdiv(rows, block_rows),)

    out2 = pl.pallas_call(
        functools.partial(_pseudo_huber_kernel, delta=float(delta)),
        grid=grid,
        in_specs=[pl.BlockSpec((block_rows, _LANES), lambda i: (i, 0))],
        out_specs=pl.BlockSpec((block_rows, _LANES), lambda i: (i, 0)),
        out_shape=jax.ShapeDtypeStruct((rows, _LANES), out_dtype),
        compiler_params=pltpu.CompilerParams(
            dimension_semantics=("parallel",)),
    )(x2)

    out = out2.reshape(-1)
    if rem:
        out = out[:n]
    return out.reshape(orig_shape)


# ----------------------------------------------------------------------------
# Pure numpy reference (mirrors the torch module exactly)
# ----------------------------------------------------------------------------
def _reference(x, delta=1.0):
    out = (x / delta) ** 2
    out = np.sqrt(out + 1.0)
    return delta * (out - 1.0)


if __name__ == "__main__":
    key = jax.random.PRNGKey(0)
    delta = 1.0  # module default

    # Shape consistent with an arbitrary elementwise input: (batch, C, H, W)
    x = jax.random.normal(key, (2, 4, 16, 16), dtype=jnp.float32) * 3.0
    out = jax.block_until_ready(pseudo_huber(x, delta=delta))
    ref = _reference(np.asarray(x, dtype=np.float32), delta=delta)
    np.testing.assert_allclose(np.asarray(out), ref, rtol=1e-5, atol=1e-5)

    # Ragged-size fallback path (total size not a multiple of 128).
    x2 = jax.random.normal(jax.random.PRNGKey(1), (5, 7, 3), dtype=jnp.float32)
    out2 = jax.block_until_ready(pseudo_huber(x2, delta=delta))
    ref2 = _reference(np.asarray(x2, dtype=np.float32), delta=delta)
    np.testing.assert_allclose(np.asarray(out2), ref2, rtol=1e-5, atol=1e-5)

    print("KERNEL_OK")
</pallas_src>

<mosaic_0001>
module attributes {stable_mosaic.version = 11 : i64} {
  func.func @_pseudo_huber_kernel(%arg0: i32, %arg1: memref<16x128xf32, #tpu.memory_space<vmem>>, %arg2: memref<16x128xf32, #tpu.memory_space<vmem>>) attributes {dimension_semantics = [#tpu.dimension_semantics<parallel>], iteration_bounds = array<i64: 1>, scalar_prefetch = 0 : i64, scratch_operands = 0 : i64, tpu.core_type = #tpu.core_type<tc>, window_params = [{transform_indices = @transform_0, window_bounds = array<i64: 16, 128>}, {transform_indices = @transform_1, window_bounds = array<i64: 16, 128>}]} {
    %c0 = arith.constant 0 : index
    %c0_0 = arith.constant 0 : index
    %0 = vector.load %arg1[%c0, %c0_0] : memref<16x128xf32, #tpu.memory_space<vmem>>, vector<16x128xf32>
    %1 = arith.mulf %0, %0 : vector<16x128xf32>
    %cst = arith.constant 1.000000e+00 : f32
    %2 = vector.broadcast %cst : f32 to vector<16x128xf32>
    %3 = arith.addf %1, %2 : vector<16x128xf32>
    %4 = math.sqrt %3 : vector<16x128xf32>
    %cst_1 = arith.constant 1.000000e+00 : f32
    %5 = vector.broadcast %cst_1 : f32 to vector<16x128xf32>
    %6 = arith.subf %4, %5 : vector<16x128xf32>
    %c0_2 = arith.constant 0 : index
    %c0_3 = arith.constant 0 : index
    %7 = vector.load %arg2[%c0_2, %c0_3] : memref<16x128xf32, #tpu.memory_space<vmem>>, vector<16x128xf32>
    tpu.vector_store %arg2[%c0_2, %c0_3], %6 {strides = array<i32>} : memref<16x128xf32, #tpu.memory_space<vmem>>, vector<16x128xf32>,
    return
  }
  func.func @transform_0(%arg0: i32) -> (i32, i32) {
    %c0_i32 = arith.constant 0 : i32
    %c0_i32_0 = arith.constant 0 : i32
    return %arg0, %c0_i32 : i32, i32
  }
  func.func @transform_1(%arg0: i32) -> (i32, i32) {
    %c0_i32 = arith.constant 0 : i32
    %c0_i32_0 = arith.constant 0 : i32
    return %arg0, %c0_i32 : i32, i32
  }
}

</mosaic_0001>

<bundles_post_ra>
// kernel: tpu_custom_call.1
= control target key start
LH: loop header
LB: loop body
LE: loop exit
PB: predicated region body
PF: predicated region fallthrough
CT: control target
= control target key end

     0   :  { %6 = vsyncpa [#allocation3], 0  ;;  %s166_s0 = inlined_call_operand.hbm [shape: f32[16,128], index: 0, kind: input, shape index: {}]   ;;  %s167_s1 = inlined_call_operand.hbm [shape: f32[16,128], index: 1, kind: output, shape index: {}]  }
   0x1   :  { %7 = vsyncpa [#allocation4], 0  ;;  %s12_s8 = sshll.u32 %s166_s0, 4  ;;  %s140_s9 = smov [#allocation2]   ;;  %s13_s8 = int_to_ptr.hbm [resolvable:$true] %s12_s8 }
   0x2   :  { %s14_s10 = sshll.u32 %s140_s9, 4  ;;  %s141_s11 = smov 128   ;;  %s15_s10 = int_to_ptr.vmem [resolvable:$true] %s14_s10 }
   0x3   :  { %s142_s12 = smov 8  }
   0x4   :  { %20 = dma.hbm_to_vmem [thread:$0]  %s13_s8, 256, %s15_s10, [#allocation3], %s141_s11, %s141_s11, %s142_s12  }
   0x5   :  { %136 = dma.done.wait [#allocation3], 256  }
   0x6   :  { %137 = vsyncadd [#allocation3], 4294967040  ;;  %v25_v0 = vld [vmem:[#allocation2] sm:$0xff]  ;;  %v26_v1 = vld [vmem:[#allocation2 + $0x8] sm:$0xff]  ;;  %s143_s0 = smov [#allocation5]   ;;  %s65_s16 = sshll.u32 %s167_s1, 4  ;;  %s66_s16 = int_to_ptr.hbm [resolvable:$true] %s65_s16 }
   0x7   :  { %v27_v2 = vmul.f32 %v25_v0, %v25_v0  ;;  %v28_v3 = vmul.f32 %v26_v1, %v26_v1  ;;  %s63_s13 = sshll.u32 %s143_s0, 4  ;;  %s64_s13 = int_to_ptr.vmem [resolvable:$true] %s63_s13 }
   0x9   :  { %v29_v4 = vadd.f32 1.0, %v27_v2  ;;  %v30_v5 = vadd.f32 1.0, %v28_v3 }
   0xb   :  { %84 = vrsqrt.f32 %v29_v4  ;;  %vm38_vm0 = vcmp.eq.f32.partialorder %v29_v4, inf  ;;  %v41_v17 = vand.u32 2147483648, %v29_v4  ;;  %vm40_vm1 = vcmp.eq.f32.partialorder %v29_v4, 0.0 }
   0xc   :  { %86 = vrsqrt.f32 %v30_v5  ;;  %vm50_vm2 = vcmp.eq.f32.partialorder %v30_v5, inf  ;;  %v53_v20 = vand.u32 2147483648, %v30_v5  ;;  %vm52_vm3 = vcmp.eq.f32.partialorder %v30_v5, 0.0 }
  0x11   :  { %v85_v6 = vpop.eup %84 }
  0x12   :  { %v87_v7 = vpop.eup %86  ;;  %v32_v8 = vmul.f32 %v85_v6, %v29_v4 }
  0x13   :  { %v44_v9 = vmul.f32 %v87_v7, %v30_v5 }
  0x14   :  { %v33_v10 = vmul.f32 %v85_v6, %v32_v8 }
  0x15   :  { %v45_v11 = vmul.f32 %v87_v7, %v44_v9 }
  0x16   :  { %v34_v12 = vmul.f32 0.5, %v33_v10 }
  0x17   :  { %v46_v13 = vmul.f32 0.5, %v45_v11 }
  0x18   :  { %v35_v14 = vsub.f32 1.5, %v34_v12 }
  0x19   :  { %v47_v15 = vsub.f32 1.5, %v46_v13 }
  0x1a   :  { %v36_v16 = vmul.f32 %v85_v6, %v35_v14 }
  0x1b   :  { %v48_v18 = vmul.f32 %v87_v7, %v47_v15 }
  0x1c   :  { %v37_v19 = vmul.f32 %v36_v16, %v29_v4 }
  0x1d   :  { %v49_v21 = vmul.f32 %v48_v18, %v30_v5 }
  0x1e   :  { %v39_v22 = vsel %vm38_vm0, %v29_v4, %v37_v19 }
  0x1f   :  { %v42_v23 = vsel %vm40_vm1, %v41_v17, %v39_v22  ;;  %v51_v24 = vsel %vm50_vm2, %v30_v5, %v49_v21 }
  0x20   :  { %v78_v25 = vadd.f32 -1.0, %v42_v23  ;;  %v54_v26 = vsel %vm52_vm3, %v53_v20, %v51_v24 }
  0x21   :  { %v79_v27 = vadd.f32 -1.0, %v54_v26 }
  0x22   :  { %57 = vst [vmem:[#allocation5] sm:$0xff] %v78_v25 }
  0x23   :  { %58 = vst [vmem:[#allocation5 + $0x8] sm:$0xff] %v79_v27 }
  0x24   :  { %71 = dma.vmem_to_hbm [thread:$0]  %s64_s13, 256, %s66_s16, [#allocation4], %s141_s11, %s141_s11, %s142_s12  }
  0x25   :  { %138 = dma.done.wait [#allocation4], 256  }
  0x26   :  { %139 = vsyncadd [#allocation4], 4294967040 }
  0x27   :  { %76 = vsyncpa [#allocation3], 1 }
  0x28   :  { %77 = vsyncpa [#allocation4], 1 }

</bundles_post_ra>
